<compile_context>
chip_gen: v7x
topology: tpu7x:2x2x1
jax: 0.10.0
libtpu: 0.0.40
codegen_flags: <defaults>
</compile_context>

<pallas_src>
import functools

import jax
import jax.numpy as jnp
from jax.experimental import pallas as pl
from jax.experimental.pallas import tpu as pltpu

BN_EPS = 1e-5          # PyTorch BatchNorm1d default
LEAKY_SLOPE = 0.01     # PyTorch LeakyReLU default
H1, H2, OUT = 12, 6, 2
DEFAULT_B_TILE = 512                 # >=512-row tiles reach ~85% of HBM roofline
VMEM_LIMIT_BYTES = 32 * 1024 * 1024  # explicit scoped-VMEM limit (v5e default is only 16 MiB)


def _leaky_relu(v):
    return jnp.where(v >= 0, v, LEAKY_SLOPE * v)


# --------------------------- kernels ---------------------------

def _proj_stats_kernel(x_ref, w1_ref, h1_ref, ps_ref, *, batch, b_tile):
    """Pass 1 (heavy): h1 = x @ W1 (bf16 HBM read, f32 accum) + per-tile BN1 stats."""
    i = pl.program_id(0)
    x = x_ref[...].astype(jnp.float32)
    h = jnp.dot(x, w1_ref[...], preferred_element_type=jnp.float32)
    h1_ref[...] = h

    # Mask rows past the true batch (ragged last tile) so they cannot pollute
    # the BatchNorm statistics; masked rows of h1/out are dropped on writeback.
    row = i * b_tile + jax.lax.broadcasted_iota(jnp.int32, h.shape, 0)
    hm = jnp.where(row < batch, h, 0.0)
    ps_ref[0, 0:1, :] = jnp.sum(hm, axis=0, keepdims=True)        # sum
    ps_ref[0, 1:2, :] = jnp.sum(hm * hm, axis=0, keepdims=True)   # sum of squares


def _mid_stats_kernel(h1_ref, aff1_ref, w2_ref, ps_ref, *, batch, b_tile):
    """Pass 2 (light): per-tile BN2 stats of h2 = leaky(bn1(h1)) @ W2."""
    i = pl.program_id(0)
    a1 = _leaky_relu(h1_ref[...] * aff1_ref[0:1, :] + aff1_ref[1:2, :])
    h2 = jnp.dot(a1, w2_ref[...], preferred_element_type=jnp.float32)

    row = i * b_tile + jax.lax.broadcasted_iota(jnp.int32, h2.shape, 0)
    hm = jnp.where(row < batch, h2, 0.0)
    ps_ref[0, 0:1, :] = jnp.sum(hm, axis=0, keepdims=True)
    ps_ref[0, 1:2, :] = jnp.sum(hm * hm, axis=0, keepdims=True)


def _apply_kernel(h1_ref, aff1_ref, w2_ref, aff2_ref, w3_ref, b3_ref, out_ref):
    """Pass 3 (fully parallel): bn1 -> leaky -> W2 -> bn2 -> leaky -> W3 + b3."""
    a1 = _leaky_relu(h1_ref[...] * aff1_ref[0:1, :] + aff1_ref[1:2, :])
    h2 = jnp.dot(a1, w2_ref[...], preferred_element_type=jnp.float32)
    a2 = _leaky_relu(h2 * aff2_ref[0:1, :] + aff2_ref[1:2, :])
    y = jnp.dot(a2, w3_ref[...], preferred_element_type=jnp.float32) + b3_ref[...]
    out_ref[...] = y.astype(out_ref.dtype)


# --------------------------- wrapper ---------------------------

def _const_spec(shape):
    """Constant-index full-array block: fetched once, VMEM-resident across tiles."""
    nd = len(shape)
    return pl.BlockSpec(shape, lambda i: (0,) * nd)


def _bn_affine(partial_stats, batch, gamma, beta):
    """Reduce per-tile (sum, sumsq) and fold training-mode BN into one FMA."""
    stats = jnp.sum(partial_stats, axis=0)               # (2, F)
    mean = stats[0:1, :] / batch
    var = stats[1:2, :] / batch - mean * mean             # biased variance
    scale = gamma * jax.lax.rsqrt(var + BN_EPS)
    shift = beta - mean * scale
    return jnp.concatenate([scale, shift], axis=0)         # (2, F): row0=scale, row1=shift


@functools.partial(jax.jit, static_argnames=("b_tile",))
def global_discriminator(x, params, alpha=1.0, *, b_tile=DEFAULT_B_TILE):
    """x: (B, input_dim).  Returns (B, 2) float32 logits."""
    # GradientReverseFunction.forward is the identity; alpha only flips grads.
    del alpha  # TODO(synk): backward gradient reversal not wired (forward-only kernel).
    B, D = x.shape

    # Batch tile: big enough to pipeline HBM DMA, clamped to B for small batches.
    bt = B if B <= b_tile else b_tile      # bt == B, or a multiple of 8 (e.g. 512)
    nt = pl.cdiv(B, bt)

    # bf16 ingestion of the dominant HBM stream (ideally the caller already
    # supplies bf16 so this cast is free); accumulation stays f32 in-kernel.
    x_bf16 = x if x.dtype == jnp.bfloat16 else x.astype(jnp.bfloat16)

    cparams = pltpu.CompilerParams(
        dimension_semantics=("parallel",),        # batch tiles shard across TCs on v7x
        vmem_limit_bytes=VMEM_LIMIT_BYTES,
    )

    # ---- pass 1: h1 = x @ W1  (+ per-tile BN1 partial stats) -------------------
    h1, ps1 = pl.pallas_call(
        functools.partial(_proj_stats_kernel, batch=B, b_tile=bt),
        grid=(nt,),
        in_specs=[
            pl.BlockSpec((bt, D), lambda i: (i, 0)),        # x tiles (pipelined)
            _const_spec((D, H1)),                           # W1 resident
        ],
        out_specs=[
            pl.BlockSpec((bt, H1), lambda i: (i, 0)),       # h1 tiles
            pl.BlockSpec((1, 2, H1), lambda i: (i, 0, 0)),  # per-tile stats
        ],
        out_shape=(
            jax.ShapeDtypeStruct((B, H1), jnp.float32),
            jax.ShapeDtypeStruct((nt, 2, H1), jnp.float32),
        ),
        compiler_params=cparams,
    )(x_bf16, params["w1"])

    aff1 = _bn_affine(ps1, B, params["g1"], params["be1"])   # (2, 12)

    # ---- pass 2: per-tile BN2 partial stats ------------------------------------
    ps2 = pl.pallas_call(
        functools.partial(_mid_stats_kernel, batch=B, b_tile=bt),
        grid=(nt,),
        in_specs=[
            pl.BlockSpec((bt, H1), lambda i: (i, 0)),
            _const_spec((2, H1)),
            _const_spec((H1, H2)),
        ],
        out_specs=pl.BlockSpec((1, 2, H2), lambda i: (i, 0, 0)),
        out_shape=jax.ShapeDtypeStruct((nt, 2, H2), jnp.float32),
        compiler_params=cparams,
    )(h1, aff1, params["w2"])

    aff2 = _bn_affine(ps2, B, params["g2"], params["be2"])   # (2, 6)

    # ---- pass 3: apply everything, fully parallel over batch tiles -------------
    out = pl.pallas_call(
        _apply_kernel,
        grid=(nt,),
        in_specs=[
            pl.BlockSpec((bt, H1), lambda i: (i, 0)),
            _const_spec((2, H1)),
            _const_spec((H1, H2)),
            _const_spec((2, H2)),
            _const_spec((H2, OUT)),
            _const_spec((1, OUT)),
        ],
        out_specs=pl.BlockSpec((bt, OUT), lambda i: (i, 0)),
        out_shape=jax.ShapeDtypeStruct((B, OUT), jnp.float32),
        compiler_params=cparams,
    )(h1, aff1, params["w2"], aff2, params["w3"], params["b3"])

    return out


# ------------------- parameter setup (plain JAX glue) -------------------

def _spectral_normalize(w_oi, key, n_iter=30, eps=1e-12):
    """PyTorch-style spectral norm on a (out_features, in_features) weight."""
    out_f, _ = w_oi.shape
    u = jax.random.normal(key, (out_f,), dtype=jnp.float32)
    u = u / (jnp.linalg.norm(u) + eps)
    for _ in range(n_iter):
        v = w_oi.T @ u
        v = v / (jnp.linalg.norm(v) + eps)
        u = w_oi @ v
        u = u / (jnp.linalg.norm(u) + eps)
    sigma = u @ (w_oi @ v)
    return w_oi / sigma


def init_params(key, input_dim):
    ks = jax.random.split(key, 4)

    def linear_init(k, fan_in, fan_out):
        bound = 1.0 / jnp.sqrt(fan_in)
        kw, kb = jax.random.split(k)
        w = jax.random.uniform(kw, (fan_out, fan_in), jnp.float32, -bound, bound)
        b = jax.random.uniform(kb, (fan_out,), jnp.float32, -bound, bound)
        return w, b

    w1_oi, b1 = linear_init(ks[0], input_dim, H1)
    w1_oi = _spectral_normalize(w1_oi, ks[1])
    w2_oi, b2 = linear_init(ks[2], H1, H2)
    w3_oi, b3 = linear_init(ks[3], H2, OUT)

    return {
        # weights pre-transposed to (in, out) so kernels do plain x @ W on the MXU
        "w1": w1_oi.T,
        "w2": w2_oi.T,
        "w3": w3_oi.T, "b3": b3.reshape(1, OUT),
        # BatchNorm affine params (2D (1,F) for VMEM friendliness)
        "g1": jnp.ones((1, H1), jnp.float32), "be1": jnp.zeros((1, H1), jnp.float32),
        "g2": jnp.ones((1, H2), jnp.float32), "be2": jnp.zeros((1, H2), jnp.float32),
        # b1/b2 kept ONLY for the reference: a Linear bias immediately followed by
        # training-mode BatchNorm is cancelled by the mean subtraction, so the
        # Pallas path omits them (perf feedback).
        "b1": b1.reshape(1, H1), "b2": b2.reshape(1, H2),
    }


def _reference(x, p):
    """Pure-JAX float32 reference matching the PyTorch module exactly (incl. b1/b2)."""
    def bn(v, g, b):
        m = jnp.mean(v, axis=0, keepdims=True)
        var = jnp.mean((v - m) ** 2, axis=0, keepdims=True)
        return (v - m) / jnp.sqrt(var + BN_EPS) * g + b

    h = x @ p["w1"] + p["b1"]
    h = _leaky_relu(bn(h, p["g1"], p["be1"]))
    h = h @ p["w2"] + p["b2"]
    h = _leaky_relu(bn(h, p["g2"], p["be2"]))
    return h @ p["w3"] + p["b3"]


if __name__ == "__main__":
    key = jax.random.PRNGKey(0)
    k_x, k_p, k_x2 = jax.random.split(key, 3)

    B, INPUT_DIM = 8, 32
    x = jax.random.normal(k_x, (B, INPUT_DIM), dtype=jnp.float32)
    params = init_params(k_p, INPUT_DIM)
    alpha = 1.0  # only affects backward (gradient reversal); identity in forward

    out = jax.block_until_ready(global_discriminator(x, params, alpha))
    ref = _reference(x, params)
    assert out.shape == (B, OUT)
    # bf16 ingestion of x loosens the tolerance (matmul accumulation stays f32)
    assert jnp.allclose(out, ref, atol=5e-2, rtol=5e-2), float(jnp.max(jnp.abs(out - ref)))

    # Multi-tile path: ragged last tile + exact cross-tile BatchNorm statistics.
    B2 = 20
    x2 = jax.random.normal(k_x2, (B2, INPUT_DIM), dtype=jnp.float32)
    out2 = jax.block_until_ready(global_discriminator(x2, params, alpha, b_tile=8))
    ref2 = _reference(x2, params)
    assert out2.shape == (B2, OUT)
    assert jnp.allclose(out2, ref2, atol=5e-2, rtol=5e-2), float(jnp.max(jnp.abs(out2 - ref2)))

    print("KERNEL_OK")
</pallas_src>

<mosaic_0001>
module attributes {stable_mosaic.version = 11 : i64} {
  func.func @_proj_stats_kernel(%arg0: i32, %arg1: memref<8x32xbf16, #tpu.memory_space<vmem>>, %arg2: memref<32x12xf32, #tpu.memory_space<vmem>>, %arg3: memref<8x12xf32, #tpu.memory_space<vmem>>, %arg4: memref<1x2x12xf32, #tpu.memory_space<vmem>>) attributes {dimension_semantics = [#tpu.dimension_semantics<parallel>], iteration_bounds = array<i64: 1>, scalar_prefetch = 0 : i64, scratch_operands = 0 : i64, tpu.core_type = #tpu.core_type<tc>, window_params = [{transform_indices = @transform_0, window_bounds = array<i64: 8, 32>}, {pipeline_mode = #tpu.pipeline_mode<synchronous>, transform_indices = @transform_1, window_bounds = array<i64: 32, 12>}, {transform_indices = @transform_2, window_bounds = array<i64: 8, 12>}, {transform_indices = @transform_3, window_bounds = array<i64: 1, 2, 12>}]} {
    %c0 = arith.constant 0 : index
    %c0_0 = arith.constant 0 : index
    %0 = vector.load %arg1[%c0, %c0_0] : memref<8x32xbf16, #tpu.memory_space<vmem>>, vector<8x32xbf16>
    %1 = arith.extf %0 : vector<8x32xbf16> to vector<8x32xf32>
    %c0_1 = arith.constant 0 : index
    %c0_2 = arith.constant 0 : index
    %2 = vector.load %arg2[%c0_1, %c0_2] : memref<32x12xf32, #tpu.memory_space<vmem>>, vector<32x12xf32>
    %cst = arith.constant dense<0.000000e+00> : vector<8x12xf32>
    %3 = tpu.matmul %1, %2, %cst {dimension_numbers = #tpu.dot_dimension_numbers<[1], [0], [0], [1], [0, 0, 1, 1], [], []>} : vector<8x32xf32>, vector<32x12xf32>, vector<8x12xf32> -> vector<8x12xf32>
    %c0_3 = arith.constant 0 : index
    %c0_4 = arith.constant 0 : index
    %4 = vector.load %arg3[%c0_3, %c0_4] : memref<8x12xf32, #tpu.memory_space<vmem>>, vector<8x12xf32>
    tpu.vector_store %arg3[%c0_3, %c0_4], %3 {strides = array<i32>} : memref<8x12xf32, #tpu.memory_space<vmem>>, vector<8x12xf32>,
    %c8_i32 = arith.constant 8 : i32
    %5 = arith.muli %arg0, %c8_i32 : i32
    %6 = tpu.iota {dimensions = array<i32: 0>} : vector<8x12xi32>
    %7 = vector.broadcast %5 : i32 to vector<8x12xi32>
    %8 = arith.addi %7, %6 : vector<8x12xi32>
    %c8_i32_5 = arith.constant 8 : i32
    %9 = vector.broadcast %c8_i32_5 : i32 to vector<8x12xi32>
    %10 = arith.cmpi slt, %8, %9 : vector<8x12xi32>
    %cst_6 = arith.constant 0.000000e+00 : f32
    %11 = vector.broadcast %cst_6 : f32 to vector<8x12xf32>
    %12 = arith.select %10, %3, %11 : vector<8x12xi1>, vector<8x12xf32>
    %cst_7 = arith.constant dense<0.000000e+00> : vector<12xf32>
    %13 = vector.multi_reduction <add>, %12, %cst_7 [0] : vector<8x12xf32> to vector<12xf32>
    %14 = vector.shape_cast %13 : vector<12xf32> to vector<1x12xf32>
    %c0_8 = arith.constant 0 : index
    %c0_9 = arith.constant 0 : index
    %c0_10 = arith.constant 0 : index
    %15 = vector.load %arg4[%c0_8, %c0_9, %c0_10] : memref<1x2x12xf32, #tpu.memory_space<vmem>>, vector<1x1x12xf32>
    %16 = vector.shape_cast %15 : vector<1x1x12xf32> to vector<1x12xf32>
    %17 = vector.shape_cast %14 : vector<1x12xf32> to vector<1x1x12xf32>
    tpu.vector_store %arg4[%c0_8, %c0_9, %c0_10], %17 {strides = array<i32>} : memref<1x2x12xf32, #tpu.memory_space<vmem>>, vector<1x1x12xf32>,
    %18 = arith.mulf %12, %12 : vector<8x12xf32>
    %cst_11 = arith.constant dense<0.000000e+00> : vector<12xf32>
    %19 = vector.multi_reduction <add>, %18, %cst_11 [0] : vector<8x12xf32> to vector<12xf32>
    %20 = vector.shape_cast %19 : vector<12xf32> to vector<1x12xf32>
    %c0_12 = arith.constant 0 : index
    %c1 = arith.constant 1 : index
    %c0_13 = arith.constant 0 : index
    %21 = vector.load %arg4[%c0_12, %c1, %c0_13] : memref<1x2x12xf32, #tpu.memory_space<vmem>>, vector<1x1x12xf32>
    %22 = vector.shape_cast %21 : vector<1x1x12xf32> to vector<1x12xf32>
    %23 = vector.shape_cast %20 : vector<1x12xf32> to vector<1x1x12xf32>
    tpu.vector_store %arg4[%c0_12, %c1, %c0_13], %23 {strides = array<i32>} : memref<1x2x12xf32, #tpu.memory_space<vmem>>, vector<1x1x12xf32>,
    return
  }
  func.func @transform_0(%arg0: i32) -> (i32, i32) {
    %c0_i32 = arith.constant 0 : i32
    %c0_i32_0 = arith.constant 0 : i32
    return %arg0, %c0_i32 : i32, i32
  }
  func.func @transform_1(%arg0: i32) -> (i32, i32) {
    %c0_i32 = arith.constant 0 : i32
    %c0_i32_0 = arith.constant 0 : i32
    %c0_i32_1 = arith.constant 0 : i32
    return %c0_i32, %c0_i32_0 : i32, i32
  }
  func.func @transform_2(%arg0: i32) -> (i32, i32) {
    %c0_i32 = arith.constant 0 : i32
    %c0_i32_0 = arith.constant 0 : i32
    return %arg0, %c0_i32 : i32, i32
  }
  func.func @transform_3(%arg0: i32) -> (i32, i32, i32) {
    %c0_i32 = arith.constant 0 : i32
    %c0_i32_0 = arith.constant 0 : i32
    %c0_i32_1 = arith.constant 0 : i32
    return %arg0, %c0_i32, %c0_i32_0 : i32, i32, i32
  }
}

module attributes {stable_mosaic.version = 11 : i64} {
  func.func @_mid_stats_kernel(%arg0: i32, %arg1: memref<8x12xf32, #tpu.memory_space<vmem>>, %arg2: memref<2x12xf32, #tpu.memory_space<vmem>>, %arg3: memref<12x6xf32, #tpu.memory_space<vmem>>, %arg4: memref<1x2x6xf32, #tpu.memory_space<vmem>>) attributes {dimension_semantics = [#tpu.dimension_semantics<parallel>], iteration_bounds = array<i64: 1>, scalar_prefetch = 0 : i64, scratch_operands = 0 : i64, tpu.core_type = #tpu.core_type<tc>, window_params = [{transform_indices = @transform_0, window_bounds = array<i64: 8, 12>}, {pipeline_mode = #tpu.pipeline_mode<synchronous>, transform_indices = @transform_1, window_bounds = array<i64: 2, 12>}, {pipeline_mode = #tpu.pipeline_mode<synchronous>, transform_indices = @transform_2, window_bounds = array<i64: 12, 6>}, {transform_indices = @transform_3, window_bounds = array<i64: 1, 2, 6>}]} {
    %c0 = arith.constant 0 : index
    %c0_0 = arith.constant 0 : index
    %0 = vector.load %arg1[%c0, %c0_0] : memref<8x12xf32, #tpu.memory_space<vmem>>, vector<8x12xf32>
    %c0_1 = arith.constant 0 : index
    %c0_2 = arith.constant 0 : index
    %1 = vector.load %arg2[%c0_1, %c0_2] : memref<2x12xf32, #tpu.memory_space<vmem>>, vector<1x12xf32>
    %2 = vector.broadcast %1 : vector<1x12xf32> to vector<8x12xf32>
    %3 = arith.mulf %0, %2 : vector<8x12xf32>
    %c1 = arith.constant 1 : index
    %c0_3 = arith.constant 0 : index
    %4 = vector.load %arg2[%c1, %c0_3] : memref<2x12xf32, #tpu.memory_space<vmem>>, vector<1x12xf32>
    %5 = vector.broadcast %4 : vector<1x12xf32> to vector<8x12xf32>
    %6 = arith.addf %3, %5 : vector<8x12xf32>
    %cst = arith.constant 0.000000e+00 : f32
    %7 = vector.broadcast %cst : f32 to vector<8x12xf32>
    %8 = arith.cmpf oge, %6, %7 : vector<8x12xf32>
    %cst_4 = arith.constant 0.00999999977 : f32
    %9 = vector.broadcast %cst_4 : f32 to vector<8x12xf32>
    %10 = arith.mulf %9, %6 : vector<8x12xf32>
    %11 = arith.select %8, %6, %10 : vector<8x12xi1>, vector<8x12xf32>
    %c0_5 = arith.constant 0 : index
    %c0_6 = arith.constant 0 : index
    %12 = vector.load %arg3[%c0_5, %c0_6] : memref<12x6xf32, #tpu.memory_space<vmem>>, vector<12x6xf32>
    %cst_7 = arith.constant dense<0.000000e+00> : vector<8x6xf32>
    %13 = tpu.matmul %11, %12, %cst_7 {dimension_numbers = #tpu.dot_dimension_numbers<[1], [0], [0], [1], [0, 0, 1, 1], [], []>} : vector<8x12xf32>, vector<12x6xf32>, vector<8x6xf32> -> vector<8x6xf32>
    %c8_i32 = arith.constant 8 : i32
    %14 = arith.muli %arg0, %c8_i32 : i32
    %15 = tpu.iota {dimensions = array<i32: 0>} : vector<8x6xi32>
    %16 = vector.broadcast %14 : i32 to vector<8x6xi32>
    %17 = arith.addi %16, %15 : vector<8x6xi32>
    %c8_i32_8 = arith.constant 8 : i32
    %18 = vector.broadcast %c8_i32_8 : i32 to vector<8x6xi32>
    %19 = arith.cmpi slt, %17, %18 : vector<8x6xi32>
    %cst_9 = arith.constant 0.000000e+00 : f32
    %20 = vector.broadcast %cst_9 : f32 to vector<8x6xf32>
    %21 = arith.select %19, %13, %20 : vector<8x6xi1>, vector<8x6xf32>
    %cst_10 = arith.constant dense<0.000000e+00> : vector<6xf32>
    %22 = vector.multi_reduction <add>, %21, %cst_10 [0] : vector<8x6xf32> to vector<6xf32>
    %23 = vector.shape_cast %22 : vector<6xf32> to vector<1x6xf32>
    %c0_11 = arith.constant 0 : index
    %c0_12 = arith.constant 0 : index
    %c0_13 = arith.constant 0 : index
    %24 = vector.load %arg4[%c0_11, %c0_12, %c0_13] : memref<1x2x6xf32, #tpu.memory_space<vmem>>, vector<1x1x6xf32>
    %25 = vector.shape_cast %24 : vector<1x1x6xf32> to vector<1x6xf32>
    %26 = vector.shape_cast %23 : vector<1x6xf32> to vector<1x1x6xf32>
    tpu.vector_store %arg4[%c0_11, %c0_12, %c0_13], %26 {strides = array<i32>} : memref<1x2x6xf32, #tpu.memory_space<vmem>>, vector<1x1x6xf32>,
    %27 = arith.mulf %21, %21 : vector<8x6xf32>
    %cst_14 = arith.constant dense<0.000000e+00> : vector<6xf32>
    %28 = vector.multi_reduction <add>, %27, %cst_14 [0] : vector<8x6xf32> to vector<6xf32>
    %29 = vector.shape_cast %28 : vector<6xf32> to vector<1x6xf32>
    %c0_15 = arith.constant 0 : index
    %c1_16 = arith.constant 1 : index
    %c0_17 = arith.constant 0 : index
    %30 = vector.load %arg4[%c0_15, %c1_16, %c0_17] : memref<1x2x6xf32, #tpu.memory_space<vmem>>, vector<1x1x6xf32>
    %31 = vector.shape_cast %30 : vector<1x1x6xf32> to vector<1x6xf32>
    %32 = vector.shape_cast %29 : vector<1x6xf32> to vector<1x1x6xf32>
    tpu.vector_store %arg4[%c0_15, %c1_16, %c0_17], %32 {strides = array<i32>} : memref<1x2x6xf32, #tpu.memory_space<vmem>>, vector<1x1x6xf32>,
    return
  }
  func.func @transform_0(%arg0: i32) -> (i32, i32) {
    %c0_i32 = arith.constant 0 : i32
    %c0_i32_0 = arith.constant 0 : i32
    return %arg0, %c0_i32 : i32, i32
  }
  func.func @transform_1(%arg0: i32) -> (i32, i32) {
    %c0_i32 = arith.constant 0 : i32
    %c0_i32_0 = arith.constant 0 : i32
    %c0_i32_1 = arith.constant 0 : i32
    return %c0_i32, %c0_i32_0 : i32, i32
  }
  func.func @transform_2(%arg0: i32) -> (i32, i32) {
    %c0_i32 = arith.constant 0 : i32
    %c0_i32_0 = arith.constant 0 : i32
    %c0_i32_1 = arith.constant 0 : i32
    return %c0_i32, %c0_i32_0 : i32, i32
  }
  func.func @transform_3(%arg0: i32) -> (i32, i32, i32) {
    %c0_i32 = arith.constant 0 : i32
    %c0_i32_0 = arith.constant 0 : i32
    %c0_i32_1 = arith.constant 0 : i32
    return %arg0, %c0_i32, %c0_i32_0 : i32, i32, i32
  }
}

module attributes {stable_mosaic.version = 11 : i64} {
  func.func @_apply_kernel(%arg0: i32, %arg1: memref<8x12xf32, #tpu.memory_space<vmem>>, %arg2: memref<2x12xf32, #tpu.memory_space<vmem>>, %arg3: memref<12x6xf32, #tpu.memory_space<vmem>>, %arg4: memref<2x6xf32, #tpu.memory_space<vmem>>, %arg5: memref<6x2xf32, #tpu.memory_space<vmem>>, %arg6: memref<1x2xf32, #tpu.memory_space<vmem>>, %arg7: memref<8x2xf32, #tpu.memory_space<vmem>>) attributes {dimension_semantics = [#tpu.dimension_semantics<parallel>], iteration_bounds = array<i64: 1>, scalar_prefetch = 0 : i64, scratch_operands = 0 : i64, tpu.core_type = #tpu.core_type<tc>, window_params = [{transform_indices = @transform_0, window_bounds = array<i64: 8, 12>}, {pipeline_mode = #tpu.pipeline_mode<synchronous>, transform_indices = @transform_1, window_bounds = array<i64: 2, 12>}, {pipeline_mode = #tpu.pipeline_mode<synchronous>, transform_indices = @transform_2, window_bounds = array<i64: 12, 6>}, {pipeline_mode = #tpu.pipeline_mode<synchronous>, transform_indices = @transform_3, window_bounds = array<i64: 2, 6>}, {pipeline_mode = #tpu.pipeline_mode<synchronous>, transform_indices = @transform_4, window_bounds = array<i64: 6, 2>}, {pipeline_mode = #tpu.pipeline_mode<synchronous>, transform_indices = @transform_5, window_bounds = array<i64: 1, 2>}, {transform_indices = @transform_6, window_bounds = array<i64: 8, 2>}]} {
    %c0 = arith.constant 0 : index
    %c0_0 = arith.constant 0 : index
    %0 = vector.load %arg1[%c0, %c0_0] : memref<8x12xf32, #tpu.memory_space<vmem>>, vector<8x12xf32>
    %c0_1 = arith.constant 0 : index
    %c0_2 = arith.constant 0 : index
    %1 = vector.load %arg2[%c0_1, %c0_2] : memref<2x12xf32, #tpu.memory_space<vmem>>, vector<1x12xf32>
    %2 = vector.broadcast %1 : vector<1x12xf32> to vector<8x12xf32>
    %3 = arith.mulf %0, %2 : vector<8x12xf32>
    %c1 = arith.constant 1 : index
    %c0_3 = arith.constant 0 : index
    %4 = vector.load %arg2[%c1, %c0_3] : memref<2x12xf32, #tpu.memory_space<vmem>>, vector<1x12xf32>
    %5 = vector.broadcast %4 : vector<1x12xf32> to vector<8x12xf32>
    %6 = arith.addf %3, %5 : vector<8x12xf32>
    %cst = arith.constant 0.000000e+00 : f32
    %7 = vector.broadcast %cst : f32 to vector<8x12xf32>
    %8 = arith.cmpf oge, %6, %7 : vector<8x12xf32>
    %cst_4 = arith.constant 0.00999999977 : f32
    %9 = vector.broadcast %cst_4 : f32 to vector<8x12xf32>
    %10 = arith.mulf %9, %6 : vector<8x12xf32>
    %11 = arith.select %8, %6, %10 : vector<8x12xi1>, vector<8x12xf32>
    %c0_5 = arith.constant 0 : index
    %c0_6 = arith.constant 0 : index
    %12 = vector.load %arg3[%c0_5, %c0_6] : memref<12x6xf32, #tpu.memory_space<vmem>>, vector<12x6xf32>
    %cst_7 = arith.constant dense<0.000000e+00> : vector<8x6xf32>
    %13 = tpu.matmul %11, %12, %cst_7 {dimension_numbers = #tpu.dot_dimension_numbers<[1], [0], [0], [1], [0, 0, 1, 1], [], []>} : vector<8x12xf32>, vector<12x6xf32>, vector<8x6xf32> -> vector<8x6xf32>
    %c0_8 = arith.constant 0 : index
    %c0_9 = arith.constant 0 : index
    %14 = vector.load %arg4[%c0_8, %c0_9] : memref<2x6xf32, #tpu.memory_space<vmem>>, vector<1x6xf32>
    %15 = vector.broadcast %14 : vector<1x6xf32> to vector<8x6xf32>
    %16 = arith.mulf %13, %15 : vector<8x6xf32>
    %c1_10 = arith.constant 1 : index
    %c0_11 = arith.constant 0 : index
    %17 = vector.load %arg4[%c1_10, %c0_11] : memref<2x6xf32, #tpu.memory_space<vmem>>, vector<1x6xf32>
    %18 = vector.broadcast %17 : vector<1x6xf32> to vector<8x6xf32>
    %19 = arith.addf %16, %18 : vector<8x6xf32>
    %cst_12 = arith.constant 0.000000e+00 : f32
    %20 = vector.broadcast %cst_12 : f32 to vector<8x6xf32>
    %21 = arith.cmpf oge, %19, %20 : vector<8x6xf32>
    %cst_13 = arith.constant 0.00999999977 : f32
    %22 = vector.broadcast %cst_13 : f32 to vector<8x6xf32>
    %23 = arith.mulf %22, %19 : vector<8x6xf32>
    %24 = arith.select %21, %19, %23 : vector<8x6xi1>, vector<8x6xf32>
    %c0_14 = arith.constant 0 : index
    %c0_15 = arith.constant 0 : index
    %25 = vector.load %arg5[%c0_14, %c0_15] : memref<6x2xf32, #tpu.memory_space<vmem>>, vector<6x2xf32>
    %cst_16 = arith.constant dense<0.000000e+00> : vector<8x2xf32>
    %26 = tpu.matmul %24, %25, %cst_16 {dimension_numbers = #tpu.dot_dimension_numbers<[1], [0], [0], [1], [0, 0, 1, 1], [], []>} : vector<8x6xf32>, vector<6x2xf32>, vector<8x2xf32> -> vector<8x2xf32>
    %c0_17 = arith.constant 0 : index
    %c0_18 = arith.constant 0 : index
    %27 = vector.load %arg6[%c0_17, %c0_18] : memref<1x2xf32, #tpu.memory_space<vmem>>, vector<1x2xf32>
    %28 = vector.broadcast %27 : vector<1x2xf32> to vector<8x2xf32>
    %29 = arith.addf %26, %28 : vector<8x2xf32>
    %c0_19 = arith.constant 0 : index
    %c0_20 = arith.constant 0 : index
    %30 = vector.load %arg7[%c0_19, %c0_20] : memref<8x2xf32, #tpu.memory_space<vmem>>, vector<8x2xf32>
    tpu.vector_store %arg7[%c0_19, %c0_20], %29 {strides = array<i32>} : memref<8x2xf32, #tpu.memory_space<vmem>>, vector<8x2xf32>,
    return
  }
  func.func @transform_0(%arg0: i32) -> (i32, i32) {
    %c0_i32 = arith.constant 0 : i32
    %c0_i32_0 = arith.constant 0 : i32
    return %arg0, %c0_i32 : i32, i32
  }
  func.func @transform_1(%arg0: i32) -> (i32, i32) {
    %c0_i32 = arith.constant 0 : i32
    %c0_i32_0 = arith.constant 0 : i32
    %c0_i32_1 = arith.constant 0 : i32
    return %c0_i32, %c0_i32_0 : i32, i32
  }
  func.func @transform_2(%arg0: i32) -> (i32, i32) {
    %c0_i32 = arith.constant 0 : i32
    %c0_i32_0 = arith.constant 0 : i32
    %c0_i32_1 = arith.constant 0 : i32
    return %c0_i32, %c0_i32_0 : i32, i32
  }
  func.func @transform_3(%arg0: i32) -> (i32, i32) {
    %c0_i32 = arith.constant 0 : i32
    %c0_i32_0 = arith.constant 0 : i32
    %c0_i32_1 = arith.constant 0 : i32
    return %c0_i32, %c0_i32_0 : i32, i32
  }
  func.func @transform_4(%arg0: i32) -> (i32, i32) {
    %c0_i32 = arith.constant 0 : i32
    %c0_i32_0 = arith.constant 0 : i32
    %c0_i32_1 = arith.constant 0 : i32
    return %c0_i32, %c0_i32_0 : i32, i32
  }
  func.func @transform_5(%arg0: i32) -> (i32, i32) {
    %c0_i32 = arith.constant 0 : i32
    %c0_i32_0 = arith.constant 0 : i32
    %c0_i32_1 = arith.constant 0 : i32
    return %c0_i32, %c0_i32_0 : i32, i32
  }
  func.func @transform_6(%arg0: i32) -> (i32, i32) {
    %c0_i32 = arith.constant 0 : i32
    %c0_i32_0 = arith.constant 0 : i32
    return %arg0, %c0_i32 : i32, i32
  }
}

</mosaic_0001>

<bundles_post_ra>
// kernel: global_discriminator.4
= control target key start
LH: loop header
LB: loop body
LE: loop exit
PB: predicated region body
PF: predicated region fallthrough
CT: control target
= control target key end

     0   :  { %vm36_vm0 = vcmask 1043456   ;;  %v162_v0 = vmov 0.0|0.0   ;;  %vm163_vm1 = vmmov 1   ;;  %vm164_vm3 = vmmov 0   ;;  %s207_s2 = inlined_call_operand.vmem [shape: f32[12,6], index: 2, kind: input, shape index: {}]   ;;  %s208_s0 = inlined_call_operand.vmem [shape: f32[8,12], index: 0, kind: input, shape index: {}]   ;;  %s209_s1 = inlined_call_operand.vmem [shape: f32[2,12], index: 1, kind: input, shape index: {}]   ;;  %s210_s3 = inlined_call_operand.vmem [shape: f32[1,2,6], index: 3, kind: output, shape index: {}]  }
   0x1   :  { %154 = vmatprep.subr.bf16.mxu0 %v162_v0  ;;  %v30_v1 = vld [vmem:[%s207_s2] sm:$0xff]  ;;  %v31_v2 = vld [vmem:[%s207_s2 + $0x8] sm:$0xf]  ;;  %vm156_vm2 = vmpackc.low %vm36_vm0, %vm163_vm1  ;;  %v165_v4 = vmov 0.0   ;;  %vm32_vm5 = vcmask 97280   ;;  %vm117_vm6 = vcmask 48128  }
   0x2   :  { %v155_v3 = vpack.c.bf16 %v31_v2, %v30_v1  ;;  %151 = vmatprep.mubr.msk.f32.mxu0 %vm164_vm3, %v165_v4  ;;  %v14_v5 = vld [vmem:[%s208_s0] sm:$0xff]  ;;  %vm125_vm7 = vcmask 40960  }
   0x3   :  { %v140_v6 = vld [vmem:[%s209_s1] ss:$0 sm:$0xff]  ;;  %v141_v7 = vld [vmem:[%s209_s1 + $0x1] ss:$0 sm:$0xff] }
   0x4   :  { %v20_v8 = vmul.f32 %v140_v6, %v14_v5  ;;  %157 = vmatpush3.bf16.msk.msra.mxu0 %vm156_vm2, %v155_v3 }
   0x6   :  { %v26_v9 = vadd.f32 %v141_v7, %v20_v8 }
   0x8   :  { %vm27_vm4 = vcmp.ge.f32.partialorder %v26_v9, 0.0  ;;  %v28_v10 = vmul.f32 0.01, %v26_v9 }
   0xa   :  { %v29_v11 = vsel %vm27_vm4, %v26_v9, %v28_v10 }
   0xb   :  { %152 = vmatmul.mubr.msk.f32.vlgmr.msra.gmra.mrb[0].mxu0 %vm32_vm5, %v29_v11 }
  0xde   :  { %v106_v12 = vpop.f32.mrb[0].mxu0 }
  0xdf   :  { %v118_v13 = vsel %vm117_vm6, %v106_v12, 0.0  ;;  %v127_v14 = vmul.f32 %v106_v12, %v106_v12  ;;  %v153_v15 = vpop.f32.mrb[1].mxu0 }
  0xe0   :  { %v119_v16 = vrot.slane %v118_v13, 4 }
  0xe1   :  { %v128_v17 = vsel %vm117_vm6, %v127_v14, 0.0 }
  0xe2   :  { %v120_v18 = vadd.f32 %v119_v16, %v118_v13  ;;  %v129_v19 = vrot.slane %v128_v17, 4 }
  0xe4   :  { %v121_v20 = vrot.slane %v120_v18, 2  ;;  %v130_v21 = vadd.f32 %v129_v19, %v128_v17 }
  0xe6   :  { %v122_v22 = vadd.f32 %v121_v20, %v120_v18  ;;  %v131_v23 = vrot.slane %v130_v21, 2 }
  0xe8   :  { %v123_v24 = vrot.slane %v122_v22, 1  ;;  %v132_v25 = vadd.f32 %v131_v23, %v130_v21 }
  0xea   :  { %v124_v26 = vadd.f32 %v123_v24, %v122_v22  ;;  %v133_v27 = vrot.slane %v132_v25, 1 }
  0xec   :  { %126 = vst.msk [vmem:[%s210_s3] sm:$0x1] %vm125_vm7, %v124_v26  ;;  %v134_v28 = vadd.f32 %v133_v27, %v132_v25 }
  0xee   :  { %135 = vst.msk [vmem:[%s210_s3 + $0x1] sm:$0x1] %vm125_vm7, %v134_v28 }

// kernel: global_discriminator.3
= control target key start
LH: loop header
LB: loop body
LE: loop exit
PB: predicated region body
PF: predicated region fallthrough
CT: control target
= control target key end

     0   :  { %v154_v0 = vmov 0.0|0.0   ;;  %vm155_vm0 = vmmov 0   ;;  %v156_v4 = vmov 0.0   ;;  %vm19_vm1 = vcmask 261120   ;;  %s201_s1 = inlined_call_operand.vmem [shape: f32[32,12], index: 1, kind: input, shape index: {}]   ;;  %s202_s0 = inlined_call_operand.vmem [shape: bf16[8,32], index: 0, kind: input, shape index: {}]   ;;  %s203_s2 = inlined_call_operand.vmem [shape: f32[8,12], index: 2, kind: output, shape index: {0}]   ;;  %s204_s3 = inlined_call_operand.vmem [shape: f32[1,2,12], index: 3, kind: output, shape index: {1}]  }
   0x1   :  { %145 = vmatprep.subr.bf16.mxu0 %v154_v0  ;;  %v15_v1 = vld [vmem:[%s201_s1] sm:$0xff]  ;;  %v16_v2 = vld [vmem:[%s201_s1 + $0x8] sm:$0xff]  ;;  %v17_v3 = vld [vmem:[%s201_s1 + $0x10] sm:$0xff]  ;;  %142 = vmatprep.mubr.msk.f32.mxu0 %vm155_vm0, %v156_v4  ;;  %vm93_vm2 = vcmask 97280   ;;  %vm109_vm3 = vcmask 90112  }
   0x2   :  { %v146_v5 = vpack.c.bf16 %v16_v2, %v15_v1  ;;  %v18_v6 = vld [vmem:[%s201_s1 + $0x18] sm:$0xff]  ;;  %v13_v8 = vld [vmem:[%s202_s0] sm:$0xf] }
   0x3   :  { %v149_v7 = vpack.c.bf16 %v18_v6, %v17_v3  ;;  %v14_v9 = vunpack.c.l.bf16 %v13_v8 }
   0x4   :  { %147 = vmatpush3.bf16.msra.mxu0 %v146_v5 }
   0x5   :  { %148 = vmatprep.subr.bf16.mxu0 %v154_v0 }
   0x8   :  { %150 = vmatpush3.bf16.msra.mxu0 %v149_v7 }
   0xb   :  { %143 = vmatmul.mubr.msk.f32.vlgmr.msra.gmra.mrb[0].mxu0 %vm19_vm1, %v14_v9 }
  0xde   :  { %v89_v10 = vpop.f32.mrb[0].mxu0 }
  0xdf   :  { %94 = vst.msk [vmem:[%s203_s2] sm:$0xff] %vm93_vm2, %v89_v10  ;;  %v102_v11 = vsel %vm93_vm2, %v89_v10, 0.0  ;;  %v111_v12 = vmul.f32 %v89_v10, %v89_v10  ;;  %v144_v13 = vpop.f32.mrb[1].mxu0 }
  0xe0   :  { %v103_v14 = vrot.slane %v102_v11, 4 }
  0xe1   :  { %v112_v15 = vsel %vm93_vm2, %v111_v12, 0.0 }
  0xe2   :  { %v104_v16 = vadd.f32 %v103_v14, %v102_v11  ;;  %v113_v17 = vrot.slane %v112_v15, 4 }
  0xe4   :  { %v105_v18 = vrot.slane %v104_v16, 2  ;;  %v114_v19 = vadd.f32 %v113_v17, %v112_v15 }
  0xe6   :  { %v106_v20 = vadd.f32 %v105_v18, %v104_v16  ;;  %v115_v21 = vrot.slane %v114_v19, 2 }
  0xe8   :  { %v107_v22 = vrot.slane %v106_v20, 1  ;;  %v116_v23 = vadd.f32 %v115_v21, %v114_v19 }
  0xea   :  { %v108_v24 = vadd.f32 %v107_v22, %v106_v20  ;;  %v117_v25 = vrot.slane %v116_v23, 1 }
  0xec   :  { %110 = vst.msk [vmem:[%s204_s3] sm:$0x1] %vm109_vm3, %v108_v24  ;;  %v118_v26 = vadd.f32 %v117_v25, %v116_v23 }
  0xee   :  { %119 = vst.msk [vmem:[%s204_s3 + $0x1] sm:$0x1] %vm109_vm3, %v118_v26 }

// kernel: global_discriminator.5
= control target key start
LH: loop header
LB: loop body
LE: loop exit
PB: predicated region body
PF: predicated region fallthrough
CT: control target
= control target key end

     0   :  { %vm45_vm0 = vcmask 1043456   ;;  %v260_v0 = vmov 0.0|0.0   ;;  %vm261_vm1 = vmmov 1   ;;  %vm262_vm3 = vmmov 0   ;;  %s329_s2 = inlined_call_operand.vmem [shape: f32[12,6], index: 2, kind: input, shape index: {}]   ;;  %s330_s0 = inlined_call_operand.vmem [shape: f32[8,12], index: 0, kind: input, shape index: {}]   ;;  %s331_s1 = inlined_call_operand.vmem [shape: f32[2,12], index: 1, kind: input, shape index: {}]   ;;  %s332_s4 = inlined_call_operand.vmem [shape: f32[6,2], index: 4, kind: input, shape index: {}]   ;;  %s333_s3 = inlined_call_operand.vmem [shape: f32[2,6], index: 3, kind: input, shape index: {}]   ;;  %s334_s5 = inlined_call_operand.vmem [shape: f32[1,2], index: 5, kind: input, shape index: {}]   ;;  %s335_s6 = inlined_call_operand.vmem [shape: f32[8,2], index: 6, kind: output, shape index: {}]  }
   0x1   :  { %252 = vmatprep.subr.bf16.mxu0 %v260_v0  ;;  %v39_v1 = vld [vmem:[%s329_s2] sm:$0xff]  ;;  %v40_v2 = vld [vmem:[%s329_s2 + $0x8] sm:$0xf]  ;;  %vm254_vm2 = vmpackc.low %vm45_vm0, %vm261_vm1  ;;  %v263_v4 = vmov 0.0   ;;  %vm41_vm5 = vcmask 97280   ;;  %vm146_vm6 = vcmask 1045504  }
   0x2   :  { %v253_v3 = vpack.c.bf16 %v40_v2, %v39_v1  ;;  %244 = vmatprep.mubr.msk.f32.mxu0 %vm262_vm3, %v263_v4  ;;  %v23_v5 = vld [vmem:[%s330_s0] sm:$0xff]  ;;  %247 = vmatprep.subr.mxu1 %v263_v4  ;;  %vm142_vm8 = vcmask 48128   ;;  %vm220_vm9 = vcmask 15360  }
   0x3   :  { %v226_v6 = vld [vmem:[%s331_s1] ss:$0 sm:$0xff]  ;;  %v227_v7 = vld [vmem:[%s331_s1 + $0x1] ss:$0 sm:$0xff]  ;;  %249 = vmatprep.mubr.msk.f32.mxu1 %vm262_vm3, %v263_v4 }
   0x4   :  { %v29_v8 = vmul.f32 %v226_v6, %v23_v5  ;;  %255 = vmatpush3.bf16.msk.msra.mxu0 %vm254_vm2, %v253_v3  ;;  %v134_v12 = vld [vmem:[%s332_s4] sm:$0x3f] }
   0x5   :  { %248 = vmatpush3.msk.msra.mxu1 %vm146_vm6, %v134_v12  ;;  %v230_v13 = vld [vmem:[%s333_s3] ss:$0 sm:$0xff]  ;;  %v231_v15 = vld [vmem:[%s333_s3 + $0x1] ss:$0 sm:$0xff] }
   0x6   :  { %v35_v9 = vadd.f32 %v227_v7, %v29_v8  ;;  %v232_v21 = vld [vmem:[%s334_s5] ss:$0 sm:$0xff] }
   0x8   :  { %vm36_vm4 = vcmp.ge.f32.partialorder %v35_v9, 0.0  ;;  %v37_v10 = vmul.f32 0.01, %v35_v9 }
   0xa   :  { %v38_v11 = vsel %vm36_vm4, %v35_v9, %v37_v10 }
   0xb   :  { %245 = vmatmul.mubr.msk.f32.vlgmr.msra.gmra.mrb[0].mxu0 %vm41_vm5, %v38_v11 }
  0xde   :  { %v115_v14 = vpop.f32.mrb[0].mxu0 }
  0xdf   :  { %v124_v16 = vmul.f32 %v230_v13, %v115_v14  ;;  %v246_v17 = vpop.f32.mrb[1].mxu0 }
  0xe1   :  { %v130_v18 = vadd.f32 %v231_v15, %v124_v16 }
  0xe3   :  { %v132_v19 = vmul.f32 0.01, %v130_v18  ;;  %vm131_vm7 = vcmp.ge.f32.partialorder %v130_v18, 0.0 }
  0xe5   :  { %v133_v20 = vsel %vm131_vm7, %v130_v18, %v132_v19 }
  0xe6   :  { %250 = vmatmul.mubr.msk.f32.vlgmr.msra.gmra.mrb[0].mxu1 %vm142_vm8, %v133_v20 }
 0x1b9   :  { %v216_v22 = vpop.f32.mrb[0].mxu1 }
 0x1ba   :  { %v217_v23 = vadd.f32 %v232_v21, %v216_v22  ;;  %v251_v24 = vpop.f32.mrb[1].mxu1 }
 0x1bc   :  { %221 = vst.msk [vmem:[%s335_s6] sm:$0xff] %vm220_vm9, %v217_v23 }

</bundles_post_ra>
